<compile_context>
chip_gen: v6e
topology: v6e:2x2x1
jax: 0.10.0
libtpu: 0.0.40
codegen_flags: <defaults>
</compile_context>

<pallas_src>
import jax
import jax.numpy as jnp
from jax.experimental import pallas as pl
from jax.experimental.pallas import tpu as pltpu

LANE = 128


def _round_up(x, m):
    return (x + m - 1) // m * m


def _pad2(arr, shape):
    pads = [(0, t - s) for s, t in zip(arr.shape, shape)]
    return jnp.pad(arr, pads)


def gcn_kernel(a_ref, m_ref, x_ref, w1_ref, b1_ref, w2_ref, b2_ref,
               w4_ref, b4_ref, out_ref):
    """One graph per grid step; bf16 MXU operands, f32 accumulation."""
    a = a_ref[0]                                   # [N, N] normalized adjacency
    cdt = a.dtype

    # conv1: relu(A_hat @ (X @ W1) + b1)
    h = jnp.dot(x_ref[0], w1_ref[...], preferred_element_type=jnp.float32)
    h = jnp.dot(a, h.astype(cdt), preferred_element_type=jnp.float32) + b1_ref[...]
    h = jnp.maximum(h, 0.0).astype(cdt)

    # conv2: relu(A_hat @ (h @ W2) + b2)
    h = jnp.dot(h, w2_ref[...], preferred_element_type=jnp.float32)
    h = jnp.dot(a, h.astype(cdt), preferred_element_type=jnp.float32) + b2_ref[...]
    h = jnp.maximum(h, 0.0).astype(cdt)

    # conv4 + dgl.mean_nodes folded:  mean_i(A_hat @ z) == m @ z,
    # where m (shape [1, N]) is the row-mean of A_hat, precomputed in the wrapper.
    z = jnp.dot(h, w4_ref[...], preferred_element_type=jnp.float32)
    out_ref[0] = (jnp.dot(m_ref[0], z.astype(cdt),
                          preferred_element_type=jnp.float32) + b4_ref[...])


def gcn_forward_batched(a_hat, x, w1, b1, w2, b2, w4, b4,
                        *, compute_dtype=jnp.bfloat16):
    """a_hat: [B,N,N], x: [B,N,F]  ->  [B, out_len] (graph readouts)."""
    B, N, _ = a_hat.shape
    F = x.shape[-1]
    H = w1.shape[1]
    out_len = w4.shape[1]
    h_pad = _round_up(H, LANE)
    out_pad = _round_up(out_len, LANE)
    cdt = compute_dtype

    # bf16 operands (accumulation stays f32 inside the kernel); zero-padding the
    # hidden/output feature dims to lane multiples is exact (padded channels are 0).
    a_c = a_hat.astype(cdt)
    m_c = jnp.mean(a_hat, axis=1, keepdims=True).astype(cdt)          # [B, 1, N]
    x_c = x.astype(cdt)
    w1_p = _pad2(w1, (F, h_pad)).astype(cdt)
    w2_p = _pad2(w2, (h_pad, h_pad)).astype(cdt)
    w4_p = _pad2(w4, (h_pad, out_pad)).astype(cdt)
    b1_p = _pad2(b1.reshape(1, -1), (1, h_pad)).astype(jnp.float32)
    b2_p = _pad2(b2.reshape(1, -1), (1, h_pad)).astype(jnp.float32)
    b4_p = _pad2(b4.reshape(1, -1), (1, out_pad)).astype(jnp.float32)

    # VMEM budget: double-buffered per-graph tiles + resident weights + headroom.
    itemsize = jnp.dtype(cdt).itemsize
    per_step = (N * N + N + N * F) * itemsize + out_pad * 4
    weights = ((F * h_pad + h_pad * h_pad + h_pad * out_pad) * itemsize
               + (2 * h_pad + out_pad) * 4)
    vmem_limit = int(2 * per_step + 2 * weights) + (8 << 20)

    def graph_spec(shape):
        return pl.BlockSpec(shape, lambda b, _s=shape: (b,) + (0,) * (len(_s) - 1))

    def const_spec(shape):
        return pl.BlockSpec(shape, lambda b, _s=shape: (0,) * len(_s))

    out = pl.pallas_call(
        gcn_kernel,
        out_shape=jax.ShapeDtypeStruct((B, 1, out_pad), jnp.float32),
        grid=(B,),
        in_specs=[
            graph_spec((1, N, N)),          # A_hat
            graph_spec((1, 1, N)),          # row-mean of A_hat
            graph_spec((1, N, F)),          # X
            const_spec((F, h_pad)),         # W1
            const_spec((1, h_pad)),         # b1
            const_spec((h_pad, h_pad)),     # W2
            const_spec((1, h_pad)),         # b2
            const_spec((h_pad, out_pad)),   # W4
            const_spec((1, out_pad)),       # b4
        ],
        out_specs=graph_spec((1, 1, out_pad)),
        compiler_params=pltpu.CompilerParams(
            dimension_semantics=("parallel",),
            vmem_limit_bytes=vmem_limit),
    )(a_c, m_c, x_c, w1_p, b1_p, w2_p, b2_p, w4_p, b4_p)

    return out[:, 0, :out_len]                       # [B, out_len]


def gcn_forward(a_hat, x, w1, b1, w2, b2, w4, b4, **kw):
    """Single-graph path matching the original module (torch.squeeze semantics)."""
    out = gcn_forward_batched(a_hat[None], x[None], w1, b1, w2, b2, w4, b4, **kw)
    return jnp.squeeze(out[0])


def build_normalized_adjacency(key, n):
    """Dense A with A[v,u]=1 for edge u->v, normalized as DGL GraphConv norm='both'."""
    adj = (jax.random.uniform(key, (n, n)) < 0.3).astype(jnp.float32)
    out_deg = jnp.maximum(jnp.sum(adj, axis=0), 1.0)   # out-degree of source u
    in_deg = jnp.maximum(jnp.sum(adj, axis=1), 1.0)    # in-degree of dest v
    return (in_deg ** -0.5)[:, None] * adj * (out_deg ** -0.5)[None, :]


def xavier_uniform(key, fan_in, fan_out):
    limit = (6.0 / (fan_in + fan_out)) ** 0.5
    return jax.random.uniform(key, (fan_in, fan_out), jnp.float32, -limit, limit)


if __name__ == "__main__":
    B, N, IN_FEATS, HIDDEN, OUT_LEN = 8, 16, 8, 32, 4

    key = jax.random.PRNGKey(0)
    k_adj, k_x, k1, k2, k3, k4 = jax.random.split(key, 6)

    adj_keys = jax.random.split(k_adj, B)
    a_hat = jnp.stack([build_normalized_adjacency(k, N) for k in adj_keys])  # [B,N,N]
    x = jax.random.normal(k_x, (B, N, IN_FEATS), jnp.float32)                # feats

    # GraphConv params: xavier-uniform weights, zero biases (DGL defaults).
    w1 = xavier_uniform(k1, IN_FEATS, HIDDEN)
    b1 = jnp.zeros((1, HIDDEN), jnp.float32)
    w2 = xavier_uniform(k2, HIDDEN, HIDDEN)
    b2 = jnp.zeros((1, HIDDEN), jnp.float32)
    _w3 = xavier_uniform(k3, HIDDEN, HIDDEN)   # conv3 exists in __init__, unused in forward
    w4 = xavier_uniform(k4, HIDDEN, OUT_LEN)
    b4 = jnp.zeros((1, OUT_LEN), jnp.float32)

    out = gcn_forward_batched(a_hat, x, w1, b1, w2, b2, w4, b4)
    out = jax.block_until_ready(out)
    assert out.shape == (B, OUT_LEN)

    # Plain-JAX f32 reference (original, unfolded formulation).
    h_ref = jnp.maximum(jnp.einsum('bij,bjf->bif', a_hat, x @ w1) + b1, 0.0)
    h_ref = jnp.maximum(jnp.einsum('bij,bjf->bif', a_hat, h_ref @ w2) + b2, 0.0)
    h_ref = jnp.einsum('bij,bjf->bif', a_hat, h_ref @ w4) + b4
    ref = jnp.mean(h_ref, axis=1)                                    # [B, OUT_LEN]
    assert jnp.allclose(out, ref, atol=3e-2, rtol=3e-2), float(jnp.max(jnp.abs(out - ref)))

    # Single-graph call keeps the original module's output shape (squeeze -> [out_len]).
    single = jax.block_until_ready(gcn_forward(a_hat[0], x[0], w1, b1, w2, b2, w4, b4))
    assert single.shape == (OUT_LEN,)
    assert jnp.allclose(single, ref[0], atol=3e-2, rtol=3e-2)

    print("KERNEL_OK")
</pallas_src>

<mosaic_0001>
module attributes {stable_mosaic.version = 11 : i64} {
  func.func @gcn_kernel(%arg0: i32, %arg1: memref<1x16x16xbf16, #tpu.memory_space<vmem>>, %arg2: memref<1x1x16xbf16, #tpu.memory_space<vmem>>, %arg3: memref<1x16x8xbf16, #tpu.memory_space<vmem>>, %arg4: memref<8x128xbf16, #tpu.memory_space<vmem>>, %arg5: memref<1x128xf32, #tpu.memory_space<vmem>>, %arg6: memref<128x128xbf16, #tpu.memory_space<vmem>>, %arg7: memref<1x128xf32, #tpu.memory_space<vmem>>, %arg8: memref<128x128xbf16, #tpu.memory_space<vmem>>, %arg9: memref<1x128xf32, #tpu.memory_space<vmem>>, %arg10: memref<1x1x128xf32, #tpu.memory_space<vmem>>) attributes {dimension_semantics = [#tpu.dimension_semantics<parallel>], iteration_bounds = array<i64: 8>, scalar_prefetch = 0 : i64, scratch_operands = 0 : i64, tpu.core_type = #tpu.core_type<tc>, window_params = [{transform_indices = @transform_0, window_bounds = array<i64: 1, 16, 16>}, {transform_indices = @transform_1, window_bounds = array<i64: 1, 1, 16>}, {transform_indices = @transform_2, window_bounds = array<i64: 1, 16, 8>}, {pipeline_mode = #tpu.pipeline_mode<synchronous>, transform_indices = @transform_3, window_bounds = array<i64: 8, 128>}, {pipeline_mode = #tpu.pipeline_mode<synchronous>, transform_indices = @transform_4, window_bounds = array<i64: 1, 128>}, {pipeline_mode = #tpu.pipeline_mode<synchronous>, transform_indices = @transform_5, window_bounds = array<i64: 128, 128>}, {pipeline_mode = #tpu.pipeline_mode<synchronous>, transform_indices = @transform_6, window_bounds = array<i64: 1, 128>}, {pipeline_mode = #tpu.pipeline_mode<synchronous>, transform_indices = @transform_7, window_bounds = array<i64: 128, 128>}, {pipeline_mode = #tpu.pipeline_mode<synchronous>, transform_indices = @transform_8, window_bounds = array<i64: 1, 128>}, {transform_indices = @transform_9, window_bounds = array<i64: 1, 1, 128>}]} {
    %c0 = arith.constant 0 : index
    %c0_0 = arith.constant 0 : index
    %c0_1 = arith.constant 0 : index
    %0 = vector.load %arg1[%c0, %c0_0, %c0_1] : memref<1x16x16xbf16, #tpu.memory_space<vmem>>, vector<1x16x16xbf16>
    %1 = vector.shape_cast %0 : vector<1x16x16xbf16> to vector<16x16xbf16>
    %c0_2 = arith.constant 0 : index
    %c0_3 = arith.constant 0 : index
    %c0_4 = arith.constant 0 : index
    %2 = vector.load %arg3[%c0_2, %c0_3, %c0_4] : memref<1x16x8xbf16, #tpu.memory_space<vmem>>, vector<1x16x8xbf16>
    %3 = vector.shape_cast %2 : vector<1x16x8xbf16> to vector<16x8xbf16>
    %c0_5 = arith.constant 0 : index
    %c0_6 = arith.constant 0 : index
    %4 = vector.load %arg4[%c0_5, %c0_6] : memref<8x128xbf16, #tpu.memory_space<vmem>>, vector<8x128xbf16>
    %cst = arith.constant dense<0.000000e+00> : vector<16x128xf32>
    %5 = tpu.matmul %3, %4, %cst {dimension_numbers = #tpu.dot_dimension_numbers<[1], [0], [0], [1], [0, 0, 1, 1], [], []>} : vector<16x8xbf16>, vector<8x128xbf16>, vector<16x128xf32> -> vector<16x128xf32>
    %6 = arith.truncf %5 : vector<16x128xf32> to vector<16x128xbf16>
    %cst_7 = arith.constant dense<0.000000e+00> : vector<16x128xf32>
    %7 = tpu.matmul %1, %6, %cst_7 {dimension_numbers = #tpu.dot_dimension_numbers<[1], [0], [0], [1], [0, 0, 1, 1], [], []>} : vector<16x16xbf16>, vector<16x128xbf16>, vector<16x128xf32> -> vector<16x128xf32>
    %c0_8 = arith.constant 0 : index
    %c0_9 = arith.constant 0 : index
    %8 = vector.load %arg5[%c0_8, %c0_9] : memref<1x128xf32, #tpu.memory_space<vmem>>, vector<1x128xf32>
    %9 = vector.broadcast %8 : vector<1x128xf32> to vector<16x128xf32>
    %10 = arith.addf %7, %9 : vector<16x128xf32>
    %cst_10 = arith.constant 0.000000e+00 : f32
    %11 = vector.broadcast %cst_10 : f32 to vector<16x128xf32>
    %12 = arith.maximumf %10, %11 : vector<16x128xf32>
    %13 = arith.truncf %12 : vector<16x128xf32> to vector<16x128xbf16>
    %c0_11 = arith.constant 0 : index
    %c0_12 = arith.constant 0 : index
    %14 = vector.load %arg6[%c0_11, %c0_12] : memref<128x128xbf16, #tpu.memory_space<vmem>>, vector<128x128xbf16>
    %cst_13 = arith.constant dense<0.000000e+00> : vector<16x128xf32>
    %15 = tpu.matmul %13, %14, %cst_13 {dimension_numbers = #tpu.dot_dimension_numbers<[1], [0], [0], [1], [0, 0, 1, 1], [], []>} : vector<16x128xbf16>, vector<128x128xbf16>, vector<16x128xf32> -> vector<16x128xf32>
    %16 = arith.truncf %15 : vector<16x128xf32> to vector<16x128xbf16>
    %cst_14 = arith.constant dense<0.000000e+00> : vector<16x128xf32>
    %17 = tpu.matmul %1, %16, %cst_14 {dimension_numbers = #tpu.dot_dimension_numbers<[1], [0], [0], [1], [0, 0, 1, 1], [], []>} : vector<16x16xbf16>, vector<16x128xbf16>, vector<16x128xf32> -> vector<16x128xf32>
    %c0_15 = arith.constant 0 : index
    %c0_16 = arith.constant 0 : index
    %18 = vector.load %arg7[%c0_15, %c0_16] : memref<1x128xf32, #tpu.memory_space<vmem>>, vector<1x128xf32>
    %19 = vector.broadcast %18 : vector<1x128xf32> to vector<16x128xf32>
    %20 = arith.addf %17, %19 : vector<16x128xf32>
    %cst_17 = arith.constant 0.000000e+00 : f32
    %21 = vector.broadcast %cst_17 : f32 to vector<16x128xf32>
    %22 = arith.maximumf %20, %21 : vector<16x128xf32>
    %23 = arith.truncf %22 : vector<16x128xf32> to vector<16x128xbf16>
    %c0_18 = arith.constant 0 : index
    %c0_19 = arith.constant 0 : index
    %24 = vector.load %arg8[%c0_18, %c0_19] : memref<128x128xbf16, #tpu.memory_space<vmem>>, vector<128x128xbf16>
    %cst_20 = arith.constant dense<0.000000e+00> : vector<16x128xf32>
    %25 = tpu.matmul %23, %24, %cst_20 {dimension_numbers = #tpu.dot_dimension_numbers<[1], [0], [0], [1], [0, 0, 1, 1], [], []>} : vector<16x128xbf16>, vector<128x128xbf16>, vector<16x128xf32> -> vector<16x128xf32>
    %c0_21 = arith.constant 0 : index
    %c0_22 = arith.constant 0 : index
    %c0_23 = arith.constant 0 : index
    %26 = vector.load %arg2[%c0_21, %c0_22, %c0_23] : memref<1x1x16xbf16, #tpu.memory_space<vmem>>, vector<1x1x16xbf16>
    %27 = vector.shape_cast %26 : vector<1x1x16xbf16> to vector<1x16xbf16>
    %28 = arith.truncf %25 : vector<16x128xf32> to vector<16x128xbf16>
    %cst_24 = arith.constant dense<0.000000e+00> : vector<1x128xf32>
    %29 = tpu.matmul %27, %28, %cst_24 {dimension_numbers = #tpu.dot_dimension_numbers<[1], [0], [0], [1], [0, 0, 1, 1], [], []>} : vector<1x16xbf16>, vector<16x128xbf16>, vector<1x128xf32> -> vector<1x128xf32>
    %c0_25 = arith.constant 0 : index
    %c0_26 = arith.constant 0 : index
    %30 = vector.load %arg9[%c0_25, %c0_26] : memref<1x128xf32, #tpu.memory_space<vmem>>, vector<1x128xf32>
    %31 = arith.addf %29, %30 : vector<1x128xf32>
    %c0_27 = arith.constant 0 : index
    %c0_28 = arith.constant 0 : index
    %c0_29 = arith.constant 0 : index
    %32 = vector.load %arg10[%c0_27, %c0_28, %c0_29] : memref<1x1x128xf32, #tpu.memory_space<vmem>>, vector<1x1x128xf32>
    %33 = vector.shape_cast %32 : vector<1x1x128xf32> to vector<1x128xf32>
    %34 = vector.shape_cast %31 : vector<1x128xf32> to vector<1x1x128xf32>
    tpu.vector_store %arg10[%c0_27, %c0_28, %c0_29], %34 {strides = array<i32>} : memref<1x1x128xf32, #tpu.memory_space<vmem>>, vector<1x1x128xf32>,
    return
  }
  func.func @transform_0(%arg0: i32) -> (i32, i32, i32) {
    %c0_i32 = arith.constant 0 : i32
    %c0_i32_0 = arith.constant 0 : i32
    %c0_i32_1 = arith.constant 0 : i32
    return %arg0, %c0_i32, %c0_i32_0 : i32, i32, i32
  }
  func.func @transform_1(%arg0: i32) -> (i32, i32, i32) {
    %c0_i32 = arith.constant 0 : i32
    %c0_i32_0 = arith.constant 0 : i32
    %c0_i32_1 = arith.constant 0 : i32
    return %arg0, %c0_i32, %c0_i32_0 : i32, i32, i32
  }
  func.func @transform_2(%arg0: i32) -> (i32, i32, i32) {
    %c0_i32 = arith.constant 0 : i32
    %c0_i32_0 = arith.constant 0 : i32
    %c0_i32_1 = arith.constant 0 : i32
    return %arg0, %c0_i32, %c0_i32_0 : i32, i32, i32
  }
  func.func @transform_3(%arg0: i32) -> (i32, i32) {
    %c0_i32 = arith.constant 0 : i32
    %c0_i32_0 = arith.constant 0 : i32
    %c0_i32_1 = arith.constant 0 : i32
    return %c0_i32, %c0_i32_0 : i32, i32
  }
  func.func @transform_4(%arg0: i32) -> (i32, i32) {
    %c0_i32 = arith.constant 0 : i32
    %c0_i32_0 = arith.constant 0 : i32
    %c0_i32_1 = arith.constant 0 : i32
    return %c0_i32, %c0_i32_0 : i32, i32
  }
  func.func @transform_5(%arg0: i32) -> (i32, i32) {
    %c0_i32 = arith.constant 0 : i32
    %c0_i32_0 = arith.constant 0 : i32
    %c0_i32_1 = arith.constant 0 : i32
    return %c0_i32, %c0_i32_0 : i32, i32
  }
  func.func @transform_6(%arg0: i32) -> (i32, i32) {
    %c0_i32 = arith.constant 0 : i32
    %c0_i32_0 = arith.constant 0 : i32
    %c0_i32_1 = arith.constant 0 : i32
    return %c0_i32, %c0_i32_0 : i32, i32
  }
  func.func @transform_7(%arg0: i32) -> (i32, i32) {
    %c0_i32 = arith.constant 0 : i32
    %c0_i32_0 = arith.constant 0 : i32
    %c0_i32_1 = arith.constant 0 : i32
    return %c0_i32, %c0_i32_0 : i32, i32
  }
  func.func @transform_8(%arg0: i32) -> (i32, i32) {
    %c0_i32 = arith.constant 0 : i32
    %c0_i32_0 = arith.constant 0 : i32
    %c0_i32_1 = arith.constant 0 : i32
    return %c0_i32, %c0_i32_0 : i32, i32
  }
  func.func @transform_9(%arg0: i32) -> (i32, i32, i32) {
    %c0_i32 = arith.constant 0 : i32
    %c0_i32_0 = arith.constant 0 : i32
    %c0_i32_1 = arith.constant 0 : i32
    return %arg0, %c0_i32, %c0_i32_0 : i32, i32, i32
  }
}

</mosaic_0001>

<bundles_post_ra>
// kernel: tpu_custom_call.1
= control target key start
LH: loop header
LB: loop body
LE: loop exit
PB: predicated region body
PF: predicated region fallthrough
CT: control target
= control target key end

     0   :  { %14 = vsyncpa [#allocation3], 0  ;;  %s1524_s0 = inlined_call_operand.vmem [shape: bf16[8,16,16], index: 0, kind: input, shape index: {}]   ;;  %s1525_s1 = inlined_call_operand.vmem [shape: bf16[8,1,16], index: 1, kind: input, shape index: {}]   ;;  %s1526_s2 = inlined_call_operand.vmem [shape: bf16[8,16,8], index: 2, kind: input, shape index: {}]   ;;  %s1527_s3 = inlined_call_operand.vmem [shape: bf16[8,128], index: 3, kind: input, shape index: {}]   ;;  %s1528_s4 = inlined_call_operand.vmem [shape: f32[1,128], index: 4, kind: input, shape index: {}]   ;;  %s1529_s5 = inlined_call_operand.hbm [shape: bf16[128,128], index: 5, kind: input, shape index: {}]   ;;  %s1530_s6 = inlined_call_operand.vmem [shape: f32[1,128], index: 6, kind: input, shape index: {}]   ;;  %s1531_s7 = inlined_call_operand.hbm [shape: bf16[128,128], index: 7, kind: input, shape index: {}]   ;;  %s1532_s8 = inlined_call_operand.vmem [shape: f32[1,128], index: 8, kind: input, shape index: {}]   ;;  %s1533_s9 = inlined_call_operand.hbm [shape: f32[8,1,128], index: 9, kind: output, shape index: {}]  }
   0x1   :  { %15 = vsyncpa [#allocation6], 0 }
   0x2   :  { %16 = vsyncpa [#allocation4], 0 }
   0x3   :  { %18 = vsyncpa [#allocation4 + $0x1], 0  ;;  %s1327_s30 = smov 0   ;;  %s1329_s10 = smov 0  }
   0x4   :  { %s1331_s11 = smov 0   ;;  %s1333_s12 = smov 0  }
   0x5 LB: > { %s1348_s13 = sadd.s32 4294967295, %s1268_s12   ;;  %s935_s14 = sadd.s32 4294967294, %s1268_s12   ;;  %s1268_s12 = sphi %s1333_s12, %s1547_s12   ;;  %s1264_s11 = sphi %s1331_s11, %s1546_s11   ;;  %s1260_s10 = sphi %s1329_s10, %s1545_s10   ;;  %s1256_s30 = sphi %s1327_s30, %s1544_s30  }
   0x6   : > { %s1352_s15 = sadd.s32 1, %s1268_s12   ;;  %s235_s16 = sadd.s32 1, %s1264_s11 }
   0x7   : > { %s232_s17 = ssub.s32 %s1268_s12, %s1352_s15  ;;  %p245_p0 = scmp.ne.s32.totalorder %s1264_s11, %s1260_s10 }
   0x8   : > { %p233_p1 = scmp.eq.s32.totalorder %s232_s17, 0  ;;  %p246_p2 = scmp.eq.s32.totalorder %s1348_s13, 7 }
   0x9   : > { %p251_p3 = scmp.ne.s32.totalorder %s1260_s10, %s1256_s30  ;;  %p252_p4 = scmp.eq.s32.totalorder %s935_s14, 7 }
   0xa   : > { %s1363_s18 = scalar_select %p233_p1, %s1264_s11, %s235_s16  }
   0xb   : > { %p1365_p5 = por %p246_p2, %p245_p0  ;;  %p1369_p6 = por %p252_p4, %p251_p3 }
   0xc   : > { %p936_p7 = scmp.ge.s32.totalorder %s1268_s12, 1  ;;  %p259_p8 = scmp.lt.s32.totalorder %s1268_s12, 9 }
   0xd   : > { %s1536_s20 = scalar_select %p1369_p6, 1, 0 }
   0xe   : > { %p1534_p9 = scmp.eq.s32.totalorder %s1348_s13, 0  ;;  %p1376_p10 = pnand %p936_p7, %p259_p8 }
   0xf   : > { %s1270_s22 = smov [#allocation2]   ;;  %s1271_s25 = smov [#allocation5]  }
  0x10   : > { %s277_s23 = sshll.u32 %s1270_s22, 4  ;;  %p1076_p11 = pneg %p1376_p10  ;;  %s278_s23 = int_to_ptr.vmem [resolvable:$true] %s277_s23 }
  0x11   : > { %s293_s26 = sshll.u32 %s1271_s25, 4  ;;  %s1159_s27 = scalar_lea.vmem %s278_s23, 1024  ;;  %s294_s26 = int_to_ptr.vmem [resolvable:$true] %s293_s26 }
  0x12   : > { %p1384_p12 = pnand %p1534_p9, %p1076_p11  ;;  %p1160_p0 = scmp.ne.s32.totalorder %s278_s23, %s1159_s27 }
  0x13   : > { %p1167_p3 = scmp.lt.s32.totalorder %s278_s23, %s278_s23  ;;  %p1168_p4 = scmp.lt.s32.totalorder %s1159_s27, %s1159_s27 }
  0x14   : > { %p1150_p13 = pneg %p1384_p12 }
  0x15   : > { %p1169_p7 = por %p1168_p4, %p1167_p3 }
  0x16   : > { %p1162_p1 = pnand %p1160_p0, %p1150_p13 }
  0x18   : > { %p1163_p2 = pneg %p1162_p1 }
  0x1a   : > { %p1170_p8 = pnand %p1169_p7, %p1163_p2 }
  0x1c   : > { %1173 = shalt.err (!%p1170_p8)
}
  0x1d   : > { %s1272_s28 = smov 64   ;;  %s1273_s29 = smov 4  }
  0x1e   : > { %1079 = dma.hbm_to_vmem [thread:$0]  (!%p1384_p12), %s1529_s5, 1024, %s278_s23, [#allocation3], %s1272_s28, %s1272_s28, %s1273_s29  }
  0x1f   : > { %s1185_s17 = scalar_lea.vmem %s294_s26, 1024  ;;  %p1193_p9 = scmp.lt.s32.totalorder %s294_s26, %s294_s26 }
  0x20   : > { %p1186_p11 = scmp.ne.s32.totalorder %s294_s26, %s1185_s17  ;;  %p1194_p6 = scmp.lt.s32.totalorder %s1185_s17, %s1185_s17 }
  0x22   : > { %p1188_p0 = pnand %p1186_p11, %p1150_p13  ;;  %p1195_p3 = por %p1194_p6, %p1193_p9 }
  0x24   : > { %p1189_p1 = pneg %p1188_p0 }
  0x26   : > { %p1196_p2 = pnand %p1195_p3, %p1189_p1 }
  0x28   : > { %1199 = shalt.err (!%p1196_p2)
}
  0x29   : > { %1082 = dma.hbm_to_vmem [thread:$0]  (!%p1384_p12), %s1531_s7, 1024, %s294_s26, [#allocation6], %s1272_s28, %s1272_s28, %s1273_s29  }
  0x2a   : > { %334 = sbr.rel (%p1376_p10) target bundleno = 1279 (0x4ff), region = 56  ;;  %p1539_p4 = scmp.eq.s32.totalorder (!%p1376_p10), %s1348_s13, 0 }
  0x2f   : > { %1243 = dma.done.wait (%p1539_p4), [#allocation3], 1024   ;;  %p1540_p13 = pmov %p1539_p4 }
  0x30   : > { %p1541_p7 = pmov %p1539_p4 }
  0x31   : > { %1245 = vsyncadd (%p1540_p13), [#allocation3], 4294966272 }
  0x32   : > { %1247 = dma.done.wait (%p1541_p7), [#allocation6], 1024   ;;  %p1542_p6 = pmov %p1539_p4 }
  0x33   : > { %p381_p9 = scmp.lt.s32.totalorder %s1348_s13, 7  ;;  %v1274_v0 = vmov 0.0   ;;  %vm1275_vm0 = vmmov 0   ;;  %vm409_vm1 = vcmask 1043456   ;;  %vm405_vm2 = vcmask 64512   ;;  %v1132_v4 = vld [vmem:[#allocation2 + $0x38] sm:$0xff]  }
  0x34   : > { %1249 = vsyncadd (%p1542_p6), [#allocation6], 4294966272  ;;  %1002 = vmatprep.subr.bf16.mxu0 %v1274_v0  ;;  %1004 = vmatprep.mubr.msk.bf16.mxu0 %vm1275_vm0, %v1274_v0  ;;  %v399_v1 = vld [vmem:[%s1527_s3] sm:$0xf]  ;;  %v1133_v5 = vld [vmem:[#allocation2 + $0x30] sm:$0xff]   ;;  %vm467_vm3 = vcmask 130048  }
  0x35   : > { %s1421_s21 = scalar_select %p381_p9, %s1348_s13, 7  ;;  %1008 = vmatprep.subr.bf16.mxu1 %v1274_v0  ;;  %1010 = vmatprep.mubr.msk.bf16.mxu1 %vm1275_vm0, %v1274_v0  ;;  %v411_v2 = vsel %vm409_vm1, %v399_v1, 0  ;;  %v1134_v6 = vld [vmem:[#allocation2 + $0x28] sm:$0xff]   ;;  %v1135_v7 = vld [vmem:[#allocation2 + $0x20] sm:$0xff]   ;;  %v1136_v8 = vld [vmem:[#allocation2 + $0x18] sm:$0xff]  }
  0x36   : > { %1003 = vmatpush3.bf16.msra.mxu0 %v411_v2  ;;  %v1137_v15 = vld [vmem:[#allocation2 + $0x10] sm:$0xff]   ;;  %v1138_v16 = vld [vmem:[#allocation2 + $0x8] sm:$0xff]   ;;  %v1139_v17 = vld [vmem:[#allocation2] sm:$0xff]   ;;  %s379_s29 = sand.u32 1, %s1260_s10  }
  0x37   : > { %s974_s23 = sshll.u32 %s1421_s21, 3  ;;  %1014 = vmatprep.subr.bf16.mxu0 %v1274_v0  ;;  %v949_v18 = vld [vmem:[%s1528_s4] ss:$0 sm:$0xff]  ;;  %v1140_v33 = vld [vmem:[#allocation5 + $0x38] sm:$0xff]   ;;  %v1141_v34 = vld [vmem:[#allocation5 + $0x30] sm:$0xff]   ;;  %s388_s28 = scalar_lea.vmem %s1525_s1, %s1421_s21 }
  0x38   : > { %s393_s27 = scalar_lea.vmem %s1526_s2, %s974_s23  ;;  %s385_s17 = scalar_lea.vmem %s1524_s0, %s974_s23  ;;  %v1142_v35 = vld [vmem:[#allocation5 + $0x28] sm:$0xff]   ;;  %v1143_v36 = vld [vmem:[#allocation5 + $0x20] sm:$0xff]   ;;  %v1144_v37 = vld [vmem:[#allocation5 + $0x18] sm:$0xff]  }
  0x39   : > { %v1130_v3 = vld [vmem:[%s393_s27] sm:$0xff]   ;;  %v1145_v38 = vld [vmem:[#allocation5 + $0x10] sm:$0xff]   ;;  %v1146_v39 = vld [vmem:[#allocation5 + $0x8] sm:$0xff]   ;;  %s380_s22 = scalar_lea.vmem [#allocation7], %s379_s29  ;;  %s825_s26 = scalar_lea.sflag [#allocation4], %s379_s29 }
  0x3a   : > { %1005 = vmatmul.mubr.msk.bf16.vlgmr.msra.gmra.mxu0 %vm405_vm2, %v1130_v3  ;;  %v1131_v14 = vld [vmem:[%s385_s17] sm:$0xff]   ;;  %s971_s17 = sshll.u32 %s1348_s13, 4  ;;  %s837_s25 = sshll.u32 %s380_s22, 4  ;;  %s1485_s25 = int_to_ptr.vmem [resolvable:$true] %s837_s25 }
  0x3b   : > { %1030 = vmatprep.mubr.msk.bf16.mxu0 %vm1275_vm0, %v1274_v0  ;;  %1015 = vmatpush3.bf16.msra.mxu0 %v1132_v4  ;;  %v1147_v40 = vld [vmem:[#allocation5] sm:$0xff]   ;;  %s1483_s21 = scalar_lea.hbm %s1533_s9, %s971_s17  ;;  %s1200_s27 = scalar_lea.vmem %s1485_s25, 16 }
  0x3c   : > { %1016 = vmatprep.subr.bf16.mxu0 %v1274_v0  ;;  %v960_v41 = vld [vmem:[%s1530_s6] ss:$0 sm:$0xff]  ;;  %p1201_p10 = scmp.ne.s32.totalorder %s1485_s25, %s1200_s27  ;;  %s1276_s13 = smov [#allocation7]  }
  0x3d   : > { %v777_v56 = vld [vmem:[%s388_s28] sm:$0x1]  ;;  %s1204_s28 = sshll.u32 %s1276_s13, 4  ;;  %s1205_s28 = int_to_ptr.vmem [resolvable:$false] %s1204_s28 }
  0x3e   : > { %v779_v57 = vld [vmem:[%s1532_s8] sm:$0x1]  ;;  %p1202_p12 = pnand %p1201_p10, %p1365_p5  ;;  %s1206_s14 = scalar_lea.vmem %s1205_s28, 32 }
  0x3f   : > { %1017 = vmatpush3.bf16.msra.mxu0 %v1133_v5  ;;  %p1207_p11 = scmp.lt.s32.totalorder %s1485_s25, %s1205_s28  ;;  %p1208_p0 = scmp.lt.s32.totalorder %s1206_s14, %s1200_s27 }
  0x40   : > { %1018 = vmatprep.subr.bf16.mxu0 %v1274_v0  ;;  %p1203_p8 = pneg %p1202_p12 }
  0x41   : > { %p1209_p1 = por %p1208_p0, %p1207_p11 }
  0x43   : > { %1019 = vmatpush3.bf16.msra.mxu0 %v1134_v6  ;;  %p1210_p3 = pnand %p1209_p1, %p1203_p8 }
  0x44   : > { %1020 = vmatprep.subr.bf16.mxu0 %v1274_v0 }
  0x47   : > { %1021 = vmatpush3.bf16.msra.mxu0 %v1135_v7 }
  0x48   : > { %1022 = vmatprep.subr.bf16.mxu0 %v1274_v0 }
  0x4b   : > { %1023 = vmatpush3.bf16.msra.mxu0 %v1136_v8 }
  0x4c   : > { %1024 = vmatprep.subr.bf16.mxu0 %v1274_v0 }
  0x4f   : > { %1025 = vmatpush3.bf16.msra.mxu0 %v1137_v15 }
  0x50   : > { %1026 = vmatprep.subr.bf16.mxu0 %v1274_v0 }
  0x53   : > { %1027 = vmatpush3.bf16.msra.mxu0 %v1138_v16 }
  0x54   : > { %1028 = vmatprep.subr.bf16.mxu0 %v1274_v0 }
  0x57   : > { %1029 = vmatpush3.bf16.msra.mxu0 %v1139_v17 }
  0x58   : > { %1060 = vmatprep.subr.bf16.mxu0 %v1274_v0 }
  0xfa   : > { %v447_v9 = vpop.f32.mrf.mxu0 }
  0xfc   : > { %v1006_v10 = vpop.f32.mrf.mxu0 }
  0xfe   : > { %v450_v11 = vpop.f32.mrf.mxu0 }
  0xff   : > { %v454_v12 = vpack.c.bf16 %v450_v11, %v447_v9 }
 0x100   : > { %v1007_v13 = vpop.f32.mrf.mxu0 }
 0x101   : > { %1009 = vmatpush3.bf16.msra.mxu1 %v454_v12 }
 0x102   : > { %1034 = vmatprep.subr.bf16.mxu1 %v1274_v0 }
 0x104   : > { %1011 = vmatmul.mubr.msk.bf16.vlgmr.msra.gmra.mxu1 %vm467_vm3, %v1131_v14 }
 0x105   : > { %1036 = vmatprep.mubr.msk.bf16.mxu1 %vm1275_vm0, %v1274_v0 }
 0x1c4   : > { %v505_v19 = vpop.f32.mrf.mxu1 }
 0x1c5   : > { %v506_v21 = vadd.f32 %v949_v18, %v505_v19 }
 0x1c6   : > { %v1012_v20 = vpop.f32.mrf.mxu1 }
 0x1c7   : > { %v512_v25 = vmax.f32 %v506_v21, 0.0 }
 0x1c8   : > { %v508_v22 = vpop.f32.mrf.mxu1 }
 0x1c9   : > { %v509_v23 = vadd.f32 %v949_v18, %v508_v22 }
 0x1ca   : > { %v1013_v24 = vpop.f32.mrf.mxu1 }
 0x1cb   : > { %v513_v26 = vmax.f32 %v509_v23, 0.0 }
 0x1cd   : > { %v514_v27 = vpack.c.bf16 %v513_v26, %v512_v25 }
 0x1cf   : > { %1031 = vmatmul.mubr.bf16.vlgmr.msra.gmra.mxu0 %v514_v27 }
 0x1d0   : > { %1062 = vmatprep.mubr.msk.bf16.mxu0 %vm1275_vm0, %v1274_v0 }
 0x28f   : > { %v613_v28 = vpop.f32.mrf.mxu0 }
 0x291   : > { %v1032_v29 = vpop.f32.mrf.mxu0 }
 0x293   : > { %v616_v30 = vpop.f32.mrf.mxu0 }
 0x294   : > { %v620_v31 = vpack.c.bf16 %v616_v30, %v613_v28 }
 0x295   : > { %v1033_v32 = vpop.f32.mrf.mxu0 }
 0x296   : > { %1035 = vmatpush3.bf16.msra.mxu1 %v620_v31 }
 0x297   : > { %1040 = vmatprep.subr.bf16.mxu1 %v1274_v0 }
 0x299   : > { %1037 = vmatmul.mubr.msk.bf16.vlgmr.msra.gmra.mxu1 %vm467_vm3, %v1131_v14 }
 0x29a   : > { %1041 = vmatpush3.bf16.msra.mxu1 %v1140_v33  ;;  %1056 = vmatprep.mubr.msk.bf16.mxu1 %vm1275_vm0, %v1274_v0 }
 0x29b   : > { %1042 = vmatprep.subr.bf16.mxu1 %v1274_v0 }
 0x29e   : > { %1043 = vmatpush3.bf16.msra.mxu1 %v1141_v34 }
 0x29f   : > { %1044 = vmatprep.subr.bf16.mxu1 %v1274_v0 }
 0x2a2   : > { %1045 = vmatpush3.bf16.msra.mxu1 %v1142_v35 }
 0x2a3   : > { %1046 = vmatprep.subr.bf16.mxu1 %v1274_v0 }
 0x2a6   : > { %1047 = vmatpush3.bf16.msra.mxu1 %v1143_v36 }
 0x2a7   : > { %1048 = vmatprep.subr.bf16.mxu1 %v1274_v0 }
 0x2aa   : > { %1049 = vmatpush3.bf16.msra.mxu1 %v1144_v37 }
 0x2ab   : > { %1050 = vmatprep.subr.bf16.mxu1 %v1274_v0 }
 0x2ae   : > { %1051 = vmatpush3.bf16.msra.mxu1 %v1145_v38 }
 0x2af   : > { %1052 = vmatprep.subr.bf16.mxu1 %v1274_v0 }
 0x2b2   : > { %1053 = vmatpush3.bf16.msra.mxu1 %v1146_v39 }
 0x2b3   : > { %1054 = vmatprep.subr.bf16.mxu1 %v1274_v0 }
 0x2b6   : > { %1055 = vmatpush3.bf16.msra.mxu1 %v1147_v40 }
 0x359   : > { %v662_v42 = vpop.f32.mrf.mxu1 }
 0x35a   : > { %v663_v44 = vadd.f32 %v960_v41, %v662_v42 }
 0x35b   : > { %v1038_v43 = vpop.f32.mrf.mxu1 }
 0x35c   : > { %v669_v48 = vmax.f32 %v663_v44, 0.0 }
 0x35d   : > { %v665_v45 = vpop.f32.mrf.mxu1 }
 0x35e   : > { %v666_v46 = vadd.f32 %v960_v41, %v665_v45 }
 0x35f   : > { %v1039_v47 = vpop.f32.mrf.mxu1 }
 0x360   : > { %v670_v49 = vmax.f32 %v666_v46, 0.0 }
 0x362   : > { %v671_v50 = vpack.c.bf16 %v670_v49, %v669_v48 }
 0x364   : > { %1057 = vmatmul.mubr.bf16.vlgmr.msra.gmra.mxu1 %v671_v50 }
 0x424   : > { %v770_v51 = vpop.f32.mrf.mxu1 }
 0x426   : > { %v1058_v52 = vpop.f32.mrf.mxu1 }
 0x428   : > { %v773_v53 = vpop.f32.mrf.mxu1 }
 0x429   : > { %v778_v54 = vpack.c.bf16 %v773_v53, %v770_v51 }
 0x42a   : > { %v1059_v55 = vpop.f32.mrf.mxu1 }
 0x42b   : > { %1061 = vmatpush3.bf16.msra.mxu0 %v778_v54 }
 0x42e   : > { %1063 = vmatmul.mubr.msk.bf16.vlgmr.msra.gmra.mxu0 %vm467_vm3, %v777_v56 }
 0x4ee   : > { %v817_v58 = vpop.f32.mrf.mxu0 }
 0x4ef   : > { %v818_v59 = vadd.f32 %v817_v58, %v779_v57 }
 0x4f0   : > { %v1064_v60 = vpop.f32.mrf.mxu0 }
 0x4f1   : > { %823 = vst [vmem:[%s380_s22] sm:$0x1] %v818_v59 }
 0x4f2   : > { %v820_v61 = vpop.f32.mrf.mxu0 }
 0x4f3   : > { %1213 = shalt.err (!%p1210_p3)
}
 0x4f4   : > { %s1214_s16 = scalar_lea.hbm %s1483_s21, 16  ;;  %s1218_s22 = scalar_lea.hbm %s1533_s9, 128 }
 0x4f5   : > { %p1215_p2 = scmp.ne.s32.totalorder %s1483_s21, %s1214_s16  ;;  %p1219_p7 = scmp.lt.s32.totalorder %s1483_s21, %s1533_s9 }
 0x4f6   : > { %p1220_p6 = scmp.lt.s32.totalorder %s1218_s22, %s1214_s16 }
 0x4f7   : > { %p1216_p4 = pnand %p1215_p2, %p1365_p5 }
 0x4f8   : > { %p1221_p9 = por %p1220_p6, %p1219_p7 }
 0x4f9   : > { %p1217_p13 = pneg %p1216_p4 }
 0x4fb   : > { %p1222_p10 = pnand %p1221_p9, %p1217_p13 }
 0x4fd   : > { %1225 = shalt.err (!%p1222_p10)
}
 0x4fe   : > { %1074 = dma.vmem_to_hbm [thread:$0]  (%p1365_p5), %s1485_s25, 16, %s1483_s21, %s825_s26   ;;  %v1065_v62 = vpop.f32.mrf.mxu0 }
 0x4ff PF: > { %p1091_p12 = scmp.ge.s32.totalorder %s1268_s12, 2  ;;  %s849_s27 = sand.u32 1, %s1256_s30  }
 0x500   : > { %p1543_p8 = scmp.ne.s32.totalorder %s1536_s20, 0  ;;  %s850_s13 = scalar_lea.sflag [#allocation4], %s849_s27 }
 0x502   : > { %p1084_p11 = pnand %p1091_p12, %p1543_p8 }
 0x504   : > { %p1085_p0 = pneg %p1084_p11 }
 0x506   : > { %1251 = dma.done.wait (%p1085_p0), %s850_s13, 16  }
 0x507   : > { %1253 = vsyncadd (%p1085_p0), %s850_s13, 4294967280  ;;  %p21_p1 = scmp.ge.s32.totalorder %s1352_s15, 10   ;;  %s1544_s30 = smov %s1260_s10 }
 0x508   : > { %s1545_s10 = smov %s1264_s11  ;;  %s1546_s11 = smov %s1363_s18 }
 0x509   : > { %s1547_s12 = smov %s1352_s15  ;;  %23 = sbr.rel (!%p21_p1) target bundleno = 5 (0x5), region = 106 }
 0x50e   :  { %854 = vsyncpa [#allocation3], 1 }
 0x50f   :  { %856 = vsyncpa [#allocation3 + $0x1], 1 }
 0x510   :  { %857 = vsyncpa [#allocation6], 1 }
 0x511   :  { %858 = vsyncpa [#allocation4], 1 }
 0x512   :  { %860 = vsyncpa [#allocation4 + $0x1], 1 }

</bundles_post_ra>
